<compile_context>
chip_gen: v7x
topology: tpu7x:2x2x1
jax: 0.10.0
libtpu: 0.0.40
codegen_flags: <defaults>
</compile_context>

<pallas_src>
import functools

import jax
import jax.numpy as jnp
import numpy as np
from jax.experimental import pallas as pl
from jax.experimental.pallas import tpu as pltpu


def _im2col_3x3(act_bf16, width, is_first_col, is_last_col):
    """Build the (9*C, HW) im2col operand for a 3x3 SAME conv.

    act_bf16:     (C, HW) bf16 activation (flattened spatial on lanes).
    is_first_col: (1, HW + 2*apron) bool, padded-slab positions at image col 0.
    is_last_col:  (1, HW + 2*apron) bool, padded-slab positions at image col W-1.
    Returns (9*C, HW) bf16, tap-major (oh outer, ow inner), channel within tap.
    """
    c, hw = act_bf16.shape
    apron = width + 1  # covers the +-(W+1) tap offsets; top/bottom borders -> zeros

    zeros = jnp.zeros((c, apron), dtype=jnp.bfloat16)
    slab = jnp.concatenate([zeros, act_bf16, zeros], axis=1)  # (c, hw + 2*apron)

    # Border masks hoisted out of the tap loop (independent of oh):
    #   ow = -1 taps wrap onto the previous row's LAST column  -> zero those,
    #   ow = +1 taps wrap onto the next row's FIRST column     -> zero those.
    slab_l = jnp.where(is_last_col, 0, slab)
    slab_r = jnp.where(is_first_col, 0, slab)

    patches = []
    for oh in (-1, 0, 1):
        for ow in (-1, 0, 1):
            src = slab_l if ow == -1 else (slab_r if ow == 1 else slab)
            start = apron + oh * width + ow
            patches.append(jax.lax.slice_in_dim(src, start, start + hw, axis=1))
    return jnp.concatenate(patches, axis=0)  # (9*c, hw) bf16


def trans_high_kernel(xg_ref, w1_ref, b1_ref, w2_ref, b2_ref, out_ref,
                      *, width, cin, cm):
    hw = xg_ref.shape[2]
    apron = width + 1

    # Column-wrap masks over the apron-padded lane axis (computed once, shared
    # by both convs; values inside the aprons are irrelevant -- slab is zero).
    lane_pad = jax.lax.broadcasted_iota(jnp.int32, (1, hw + 2 * apron), 1)
    col = jnp.remainder(lane_pad - apron, width)
    is_first_col = col == 0
    is_last_col = col == width - 1

    xg = xg_ref[0]  # (2*cin, hw) bf16: x stacked over guide

    # ---- stage 1: fused encoder(x) + scale/shift(guide) conv, one MXU dot ----
    im1 = _im2col_3x3(xg, width, is_first_col, is_last_col)      # (9*2cin, hw)
    y1 = jnp.dot(w1_ref[...], im1,
                 preferred_element_type=jnp.float32) + b1_ref[...]   # (3cm, hw) f32
    enc = y1[:cm]
    scale = y1[cm:2 * cm]
    shift = y1[2 * cm:]
    # nn.LeakyReLU(True): negative_slope == 1.0 -> identity (folded away).
    mod = enc + enc * scale + shift                               # (cm, hw) f32

    # ---- stage 2: decoder conv, one MXU dot ----
    im2 = _im2col_3x3(mod.astype(jnp.bfloat16), width,
                      is_first_col, is_last_col)                  # (9*cm, hw)
    dec = jnp.dot(w2_ref[...], im2,
                  preferred_element_type=jnp.float32) + b2_ref[...]  # (cout, hw)

    # Residual: upcast the bf16 x slab only here.
    out_ref[0] = xg[:cin].astype(jnp.float32) + dec


def trans_high(x, guide, params):
    """x, guide: (B, C, H, W) float32 (NCHW, as in the PyTorch module)."""
    B, cin, H, W = x.shape
    hw = H * W
    cm = params["w_enc"].shape[-1]
    cout = params["w_dec"].shape[-1]
    assert cout == cin, "residual add requires out_ch == in_ch"
    assert cm % 8 == 0, "inter_ch must be a multiple of 8 (sublane-aligned split)"

    # Stack x and guide on the channel axis, flatten spatial onto lanes, ship
    # as bf16 (halves input DMA traffic; upcast happens only at the residual).
    xg = jnp.concatenate([x, guide], axis=1).reshape(B, 2 * cin, hw)
    xg = xg.astype(jnp.bfloat16)

    # ---- host-side weight packing (tap-major K = 9 * channels) ----
    def taps(w):  # HWIO (3,3,Ci,Co) -> (Co, 9, Ci)
        co, ci = w.shape[3], w.shape[2]
        return jnp.transpose(w, (3, 0, 1, 2)).reshape(co, 9, ci)

    we, wsc, wsh = taps(params["w_enc"]), taps(params["w_sc"]), taps(params["w_sh"])
    zero_blk = jnp.zeros_like(we)
    # Block-diagonal per tap: enc rows see only x channels, scale/shift rows
    # see only guide channels (K order within a tap: [x chans | guide chans]).
    w1 = jnp.concatenate([
        jnp.concatenate([we, zero_blk], axis=2),     # enc rows
        jnp.concatenate([zero_blk, wsc], axis=2),    # scale rows
        jnp.concatenate([zero_blk, wsh], axis=2),    # shift rows
    ], axis=0).reshape(3 * cm, 9 * 2 * cin).astype(jnp.bfloat16)

    w2 = taps(params["w_dec"]).reshape(cout, 9 * cm).astype(jnp.bfloat16)

    b1 = jnp.concatenate(
        [params["b_enc"], params["b_sc"], params["b_sh"]],
        axis=-1).reshape(-1, 1).astype(jnp.float32)                # (3cm, 1)
    b2 = params["b_dec"].reshape(-1, 1).astype(jnp.float32)        # (cout, 1)

    kernel = functools.partial(trans_high_kernel, width=W, cin=cin, cm=cm)

    out_flat = pl.pallas_call(
        kernel,
        out_shape=jax.ShapeDtypeStruct((B, cout, hw), jnp.float32),
        grid=(B,),
        in_specs=[
            pl.BlockSpec((1, 2 * cin, hw), lambda b: (b, 0, 0)),
            pl.BlockSpec((3 * cm, 9 * 2 * cin), lambda b: (0, 0)),
            pl.BlockSpec((3 * cm, 1), lambda b: (0, 0)),
            pl.BlockSpec((cout, 9 * cm), lambda b: (0, 0)),
            pl.BlockSpec((cout, 1), lambda b: (0, 0)),
        ],
        out_specs=pl.BlockSpec((1, cout, hw), lambda b: (b, 0, 0)),
        # Batch items are independent; no cross-step scratch state -> the grid
        # axis can be sharded across TensorCores (v7x), harmless on v5e/v6e.
        compiler_params=pltpu.CompilerParams(
            dimension_semantics=("parallel",)),
    )(xg, w1, b1, w2, b2)

    # For large H*W add a row-tile grid axis (+-1 row halo) and raise
    # vmem_limit_bytes; per-step VMEM here is well under 1 MiB so it is omitted.
    return out_flat.reshape(B, cout, H, W)


# ----------------------- pure-JAX reference for checking -----------------------
def _conv_ref(x, w, b):  # x: NCHW, w: HWIO, b: (1, Co)
    y = jax.lax.conv_general_dilated(
        x, w, (1, 1), "SAME",
        dimension_numbers=("NCHW", "HWIO", "NCHW"),
        precision=jax.lax.Precision.HIGHEST)
    return y + b.reshape(1, -1, 1, 1)


def trans_high_ref(x, guide, p):
    enc = _conv_ref(x, p["w_enc"], p["b_enc"])        # LeakyReLU(True) == identity
    scale = _conv_ref(guide, p["w_sc"], p["b_sc"])
    shift = _conv_ref(guide, p["w_sh"], p["b_sh"])
    mod = enc + enc * scale + shift
    dec = _conv_ref(mod, p["w_dec"], p["b_dec"])
    return x + dec


if __name__ == "__main__":
    B, H, W = 2, 16, 16
    in_ch = out_ch = 4           # residual add requires in_ch == out_ch
    inter_ch = 32                # module default inter_ch

    key = jax.random.PRNGKey(0)
    ks = jax.random.split(key, 10)

    # Quantize inputs/params to bf16-representable f32 so the kernel's bf16 MXU
    # path (intentional precision relaxation) can be checked against an f32
    # HIGHEST-precision reference.
    def q(a):
        return a.astype(jnp.bfloat16).astype(jnp.float32)

    x = q(jax.random.normal(ks[0], (B, in_ch, H, W), dtype=jnp.float32))
    guide = q(jax.random.normal(ks[1], (B, in_ch, H, W), dtype=jnp.float32))

    def w_init(k, shape):
        return q(0.1 * jax.random.normal(k, shape, dtype=jnp.float32))

    def b_init(k, n):
        return q(0.01 * jax.random.normal(k, (1, n), dtype=jnp.float32))

    params = {
        "w_enc": w_init(ks[2], (3, 3, in_ch, inter_ch)),
        "b_enc": b_init(ks[3], inter_ch),
        "w_sc":  w_init(ks[4], (3, 3, in_ch, inter_ch)),
        "b_sc":  b_init(ks[5], inter_ch),
        "w_sh":  w_init(ks[6], (3, 3, in_ch, inter_ch)),
        "b_sh":  b_init(ks[7], inter_ch),
        "w_dec": w_init(ks[8], (3, 3, inter_ch, out_ch)),
        "b_dec": b_init(ks[9], out_ch),
    }

    out = jax.block_until_ready(trans_high(x, guide, params))
    ref = jax.block_until_ready(trans_high_ref(x, guide, params))

    # Tolerance reflects the intentional bf16 matmul operands (the only lossy
    # step is the f32 'mod' being cast to bf16 before the decoder conv).
    np.testing.assert_allclose(np.asarray(out), np.asarray(ref),
                               rtol=2e-2, atol=2e-2)
    print("KERNEL_OK")
</pallas_src>

<mosaic_0001>
module attributes {stable_mosaic.version = 11 : i64} {
  func.func @trans_high_kernel(%arg0: i32, %arg1: memref<1x8x256xbf16, #tpu.memory_space<vmem>>, %arg2: memref<96x72xbf16, #tpu.memory_space<vmem>>, %arg3: memref<96x1xf32, #tpu.memory_space<vmem>>, %arg4: memref<4x288xbf16, #tpu.memory_space<vmem>>, %arg5: memref<4x1xf32, #tpu.memory_space<vmem>>, %arg6: memref<1x4x256xf32, #tpu.memory_space<vmem>>) attributes {dimension_semantics = [#tpu.dimension_semantics<parallel>], iteration_bounds = array<i64: 2>, scalar_prefetch = 0 : i64, scratch_operands = 0 : i64, tpu.core_type = #tpu.core_type<tc>, window_params = [{transform_indices = @transform_0, window_bounds = array<i64: 1, 8, 256>}, {pipeline_mode = #tpu.pipeline_mode<synchronous>, transform_indices = @transform_1, window_bounds = array<i64: 96, 72>}, {pipeline_mode = #tpu.pipeline_mode<synchronous>, transform_indices = @transform_2, window_bounds = array<i64: 96, 1>}, {pipeline_mode = #tpu.pipeline_mode<synchronous>, transform_indices = @transform_3, window_bounds = array<i64: 4, 288>}, {pipeline_mode = #tpu.pipeline_mode<synchronous>, transform_indices = @transform_4, window_bounds = array<i64: 4, 1>}, {transform_indices = @transform_5, window_bounds = array<i64: 1, 4, 256>}]} {
    %0 = tpu.iota {dimensions = array<i32: 1>} : vector<1x290xi32>
    %c17_i32 = arith.constant 17 : i32
    %1 = vector.broadcast %c17_i32 : i32 to vector<1x290xi32>
    %2 = arith.subi %0, %1 : vector<1x290xi32>
    %c16_i32 = arith.constant 16 : i32
    %c0_i32 = arith.constant 0 : i32
    %3 = arith.cmpi eq, %c16_i32, %c0_i32 : i32
    %c1_i32 = arith.constant 1 : i32
    %4 = arith.select %3, %c1_i32, %c16_i32 : i32
    %5 = vector.broadcast %4 : i32 to vector<1x290xi32>
    %6 = arith.remsi %2, %5 : vector<1x290xi32>
    %c0_i32_0 = arith.constant 0 : i32
    %7 = vector.broadcast %c0_i32_0 : i32 to vector<1x290xi32>
    %8 = arith.cmpi ne, %6, %7 : vector<1x290xi32>
    %c0_i32_1 = arith.constant 0 : i32
    %9 = vector.broadcast %c0_i32_1 : i32 to vector<1x290xi32>
    %10 = arith.cmpi slt, %6, %9 : vector<1x290xi32>
    %c0_i32_2 = arith.constant 0 : i32
    %11 = arith.cmpi slt, %4, %c0_i32_2 : i32
    %12 = vector.broadcast %11 : i1 to vector<1x290xi1>
    %13 = vector.broadcast %12 : vector<1x290xi1> to vector<1x290xi1>
    %14 = arith.xori %10, %13 : vector<1x290xi1>
    %15 = arith.andi %14, %8 : vector<1x290xi1>
    %16 = vector.broadcast %4 : i32 to vector<1x290xi32>
    %17 = arith.addi %6, %16 : vector<1x290xi32>
    %18 = arith.select %15, %17, %6 : vector<1x290xi1>, vector<1x290xi32>
    %c0_i32_3 = arith.constant 0 : i32
    %19 = vector.broadcast %c0_i32_3 : i32 to vector<1x290xi32>
    %20 = arith.cmpi eq, %18, %19 : vector<1x290xi32>
    %c15_i32 = arith.constant 15 : i32
    %21 = vector.broadcast %c15_i32 : i32 to vector<1x290xi32>
    %22 = arith.cmpi eq, %18, %21 : vector<1x290xi32>
    %c0 = arith.constant 0 : index
    %c0_4 = arith.constant 0 : index
    %c0_5 = arith.constant 0 : index
    %23 = vector.load %arg1[%c0, %c0_4, %c0_5] : memref<1x8x256xbf16, #tpu.memory_space<vmem>>, vector<1x8x256xbf16>
    %24 = vector.shape_cast %23 : vector<1x8x256xbf16> to vector<8x256xbf16>
    %cst = arith.constant 0.000000e+00 : bf16
    %25 = vector.broadcast %cst : bf16 to vector<8x17xbf16>
    %26 = tpu.concatenate %25, %24, %25 in 1 : vector<8x17xbf16>, vector<8x256xbf16>, vector<8x17xbf16> -> vector<8x290xbf16>
    %c0_i32_6 = arith.constant 0 : i32
    %27 = arith.sitofp %c0_i32_6 : i32 to bf16
    %28 = vector.shape_cast %22 : vector<1x290xi1> to vector<1x290xi1>
    %29 = vector.broadcast %28 : vector<1x290xi1> to vector<8x290xi1>
    %30 = vector.broadcast %27 : bf16 to vector<8x290xbf16>
    %31 = arith.select %29, %30, %26 : vector<8x290xi1>, vector<8x290xbf16>
    %c0_i32_7 = arith.constant 0 : i32
    %32 = arith.sitofp %c0_i32_7 : i32 to bf16
    %33 = vector.shape_cast %20 : vector<1x290xi1> to vector<1x290xi1>
    %34 = vector.broadcast %33 : vector<1x290xi1> to vector<8x290xi1>
    %35 = vector.broadcast %32 : bf16 to vector<8x290xbf16>
    %36 = arith.select %34, %35, %26 : vector<8x290xi1>, vector<8x290xbf16>
    %37 = vector.extract_strided_slice %31 {offsets = [0, 0], sizes = [8, 256], strides = [1, 1]} : vector<8x290xbf16> to vector<8x256xbf16>
    %38 = vector.extract_strided_slice %26 {offsets = [0, 1], sizes = [8, 256], strides = [1, 1]} : vector<8x290xbf16> to vector<8x256xbf16>
    %39 = vector.extract_strided_slice %36 {offsets = [0, 2], sizes = [8, 256], strides = [1, 1]} : vector<8x290xbf16> to vector<8x256xbf16>
    %40 = vector.extract_strided_slice %31 {offsets = [0, 16], sizes = [8, 256], strides = [1, 1]} : vector<8x290xbf16> to vector<8x256xbf16>
    %41 = vector.extract_strided_slice %26 {offsets = [0, 17], sizes = [8, 256], strides = [1, 1]} : vector<8x290xbf16> to vector<8x256xbf16>
    %42 = vector.extract_strided_slice %36 {offsets = [0, 18], sizes = [8, 256], strides = [1, 1]} : vector<8x290xbf16> to vector<8x256xbf16>
    %43 = vector.extract_strided_slice %31 {offsets = [0, 32], sizes = [8, 256], strides = [1, 1]} : vector<8x290xbf16> to vector<8x256xbf16>
    %44 = vector.extract_strided_slice %26 {offsets = [0, 33], sizes = [8, 256], strides = [1, 1]} : vector<8x290xbf16> to vector<8x256xbf16>
    %45 = vector.extract_strided_slice %36 {offsets = [0, 34], sizes = [8, 256], strides = [1, 1]} : vector<8x290xbf16> to vector<8x256xbf16>
    %46 = tpu.concatenate %37, %38, %39, %40, %41, %42, %43, %44, %45 in 0 : vector<8x256xbf16>, vector<8x256xbf16>, vector<8x256xbf16>, vector<8x256xbf16>, vector<8x256xbf16>, vector<8x256xbf16>, vector<8x256xbf16>, vector<8x256xbf16>, vector<8x256xbf16> -> vector<72x256xbf16>
    %c0_8 = arith.constant 0 : index
    %c0_9 = arith.constant 0 : index
    %47 = vector.load %arg2[%c0_8, %c0_9] : memref<96x72xbf16, #tpu.memory_space<vmem>>, vector<96x72xbf16>
    %cst_10 = arith.constant dense<0.000000e+00> : vector<96x256xf32>
    %48 = tpu.matmul %47, %46, %cst_10 {dimension_numbers = #tpu.dot_dimension_numbers<[1], [0], [0], [1], [0, 0, 1, 1], [], []>} : vector<96x72xbf16>, vector<72x256xbf16>, vector<96x256xf32> -> vector<96x256xf32>
    %c0_11 = arith.constant 0 : index
    %c0_12 = arith.constant 0 : index
    %49 = vector.load %arg3[%c0_11, %c0_12] : memref<96x1xf32, #tpu.memory_space<vmem>>, vector<96x1xf32>
    %50 = vector.broadcast %49 : vector<96x1xf32> to vector<96x256xf32>
    %51 = arith.addf %48, %50 : vector<96x256xf32>
    %52 = vector.extract_strided_slice %51 {offsets = [0, 0], sizes = [32, 256], strides = [1, 1]} : vector<96x256xf32> to vector<32x256xf32>
    %53 = vector.extract_strided_slice %51 {offsets = [32, 0], sizes = [32, 256], strides = [1, 1]} : vector<96x256xf32> to vector<32x256xf32>
    %54 = vector.extract_strided_slice %51 {offsets = [64, 0], sizes = [32, 256], strides = [1, 1]} : vector<96x256xf32> to vector<32x256xf32>
    %55 = arith.mulf %52, %53 : vector<32x256xf32>
    %56 = arith.addf %52, %55 : vector<32x256xf32>
    %57 = arith.addf %56, %54 : vector<32x256xf32>
    %58 = arith.truncf %57 : vector<32x256xf32> to vector<32x256xbf16>
    %cst_13 = arith.constant 0.000000e+00 : bf16
    %59 = vector.broadcast %cst_13 : bf16 to vector<32x17xbf16>
    %60 = tpu.concatenate %59, %58, %59 in 1 : vector<32x17xbf16>, vector<32x256xbf16>, vector<32x17xbf16> -> vector<32x290xbf16>
    %c0_i32_14 = arith.constant 0 : i32
    %61 = arith.sitofp %c0_i32_14 : i32 to bf16
    %62 = vector.shape_cast %22 : vector<1x290xi1> to vector<1x290xi1>
    %63 = vector.broadcast %62 : vector<1x290xi1> to vector<32x290xi1>
    %64 = vector.broadcast %61 : bf16 to vector<32x290xbf16>
    %65 = arith.select %63, %64, %60 : vector<32x290xi1>, vector<32x290xbf16>
    %c0_i32_15 = arith.constant 0 : i32
    %66 = arith.sitofp %c0_i32_15 : i32 to bf16
    %67 = vector.shape_cast %20 : vector<1x290xi1> to vector<1x290xi1>
    %68 = vector.broadcast %67 : vector<1x290xi1> to vector<32x290xi1>
    %69 = vector.broadcast %66 : bf16 to vector<32x290xbf16>
    %70 = arith.select %68, %69, %60 : vector<32x290xi1>, vector<32x290xbf16>
    %71 = vector.extract_strided_slice %65 {offsets = [0, 0], sizes = [32, 256], strides = [1, 1]} : vector<32x290xbf16> to vector<32x256xbf16>
    %72 = vector.extract_strided_slice %60 {offsets = [0, 1], sizes = [32, 256], strides = [1, 1]} : vector<32x290xbf16> to vector<32x256xbf16>
    %73 = vector.extract_strided_slice %70 {offsets = [0, 2], sizes = [32, 256], strides = [1, 1]} : vector<32x290xbf16> to vector<32x256xbf16>
    %74 = vector.extract_strided_slice %65 {offsets = [0, 16], sizes = [32, 256], strides = [1, 1]} : vector<32x290xbf16> to vector<32x256xbf16>
    %75 = vector.extract_strided_slice %60 {offsets = [0, 17], sizes = [32, 256], strides = [1, 1]} : vector<32x290xbf16> to vector<32x256xbf16>
    %76 = vector.extract_strided_slice %70 {offsets = [0, 18], sizes = [32, 256], strides = [1, 1]} : vector<32x290xbf16> to vector<32x256xbf16>
    %77 = vector.extract_strided_slice %65 {offsets = [0, 32], sizes = [32, 256], strides = [1, 1]} : vector<32x290xbf16> to vector<32x256xbf16>
    %78 = vector.extract_strided_slice %60 {offsets = [0, 33], sizes = [32, 256], strides = [1, 1]} : vector<32x290xbf16> to vector<32x256xbf16>
    %79 = vector.extract_strided_slice %70 {offsets = [0, 34], sizes = [32, 256], strides = [1, 1]} : vector<32x290xbf16> to vector<32x256xbf16>
    %80 = tpu.concatenate %71, %72, %73, %74, %75, %76, %77, %78, %79 in 0 : vector<32x256xbf16>, vector<32x256xbf16>, vector<32x256xbf16>, vector<32x256xbf16>, vector<32x256xbf16>, vector<32x256xbf16>, vector<32x256xbf16>, vector<32x256xbf16>, vector<32x256xbf16> -> vector<288x256xbf16>
    %c0_16 = arith.constant 0 : index
    %c0_17 = arith.constant 0 : index
    %81 = vector.load %arg4[%c0_16, %c0_17] : memref<4x288xbf16, #tpu.memory_space<vmem>>, vector<4x288xbf16>
    %cst_18 = arith.constant dense<0.000000e+00> : vector<4x256xf32>
    %82 = tpu.matmul %81, %80, %cst_18 {dimension_numbers = #tpu.dot_dimension_numbers<[1], [0], [0], [1], [0, 0, 1, 1], [], []>} : vector<4x288xbf16>, vector<288x256xbf16>, vector<4x256xf32> -> vector<4x256xf32>
    %c0_19 = arith.constant 0 : index
    %c0_20 = arith.constant 0 : index
    %83 = vector.load %arg5[%c0_19, %c0_20] : memref<4x1xf32, #tpu.memory_space<vmem>>, vector<4x1xf32>
    %84 = vector.broadcast %83 : vector<4x1xf32> to vector<4x256xf32>
    %85 = arith.addf %82, %84 : vector<4x256xf32>
    %86 = vector.extract_strided_slice %24 {offsets = [0, 0], sizes = [4, 256], strides = [1, 1]} : vector<8x256xbf16> to vector<4x256xbf16>
    %87 = arith.extf %86 : vector<4x256xbf16> to vector<4x256xf32>
    %88 = arith.addf %87, %85 : vector<4x256xf32>
    %c0_21 = arith.constant 0 : index
    %c0_22 = arith.constant 0 : index
    %c0_23 = arith.constant 0 : index
    %89 = vector.load %arg6[%c0_21, %c0_22, %c0_23] : memref<1x4x256xf32, #tpu.memory_space<vmem>>, vector<1x4x256xf32>
    %90 = vector.shape_cast %89 : vector<1x4x256xf32> to vector<4x256xf32>
    %91 = vector.shape_cast %88 : vector<4x256xf32> to vector<1x4x256xf32>
    tpu.vector_store %arg6[%c0_21, %c0_22, %c0_23], %91 {strides = array<i32>} : memref<1x4x256xf32, #tpu.memory_space<vmem>>, vector<1x4x256xf32>,
    return
  }
  func.func @transform_0(%arg0: i32) -> (i32, i32, i32) {
    %c0_i32 = arith.constant 0 : i32
    %c0_i32_0 = arith.constant 0 : i32
    %c0_i32_1 = arith.constant 0 : i32
    return %arg0, %c0_i32, %c0_i32_0 : i32, i32, i32
  }
  func.func @transform_1(%arg0: i32) -> (i32, i32) {
    %c0_i32 = arith.constant 0 : i32
    %c0_i32_0 = arith.constant 0 : i32
    %c0_i32_1 = arith.constant 0 : i32
    return %c0_i32, %c0_i32_0 : i32, i32
  }
  func.func @transform_2(%arg0: i32) -> (i32, i32) {
    %c0_i32 = arith.constant 0 : i32
    %c0_i32_0 = arith.constant 0 : i32
    %c0_i32_1 = arith.constant 0 : i32
    return %c0_i32, %c0_i32_0 : i32, i32
  }
  func.func @transform_3(%arg0: i32) -> (i32, i32) {
    %c0_i32 = arith.constant 0 : i32
    %c0_i32_0 = arith.constant 0 : i32
    %c0_i32_1 = arith.constant 0 : i32
    return %c0_i32, %c0_i32_0 : i32, i32
  }
  func.func @transform_4(%arg0: i32) -> (i32, i32) {
    %c0_i32 = arith.constant 0 : i32
    %c0_i32_0 = arith.constant 0 : i32
    %c0_i32_1 = arith.constant 0 : i32
    return %c0_i32, %c0_i32_0 : i32, i32
  }
  func.func @transform_5(%arg0: i32) -> (i32, i32, i32) {
    %c0_i32 = arith.constant 0 : i32
    %c0_i32_0 = arith.constant 0 : i32
    %c0_i32_1 = arith.constant 0 : i32
    return %arg0, %c0_i32, %c0_i32_0 : i32, i32, i32
  }
}

</mosaic_0001>

<bundles_post_ra>
// kernel: tpu_custom_call.1
= control target key start
LH: loop header
LB: loop body
LE: loop exit
PB: predicated region body
PF: predicated region fallthrough
CT: control target
= control target key end

     0   :  { %10 = vsyncpa [#allocation3], 0  ;;  %s1798_s0 = inlined_call_operand.vmem [shape: bf16[2,8,256], index: 0, kind: input, shape index: {}]   ;;  %s1799_s1 = inlined_call_operand.vmem [shape: bf16[96,72], index: 1, kind: input, shape index: {}]   ;;  %s1800_s2 = inlined_call_operand.vmem [shape: f32[96,1], index: 2, kind: input, shape index: {}]   ;;  %s1801_s3 = inlined_call_operand.vmem [shape: bf16[4,288], index: 3, kind: input, shape index: {}]   ;;  %s1802_s4 = inlined_call_operand.vmem [shape: f32[4,1], index: 4, kind: input, shape index: {}]   ;;  %s1803_s5 = inlined_call_operand.hbm [shape: f32[2,4,256], index: 5, kind: output, shape index: {}]  }
   0x1   :  { %12 = vsyncpa [#allocation3 + $0x1], 0  ;;  %s1355_s18 = smov 0   ;;  %s1357_s19 = smov 0  }
   0x2   :  { %s1359_s20 = smov 0   ;;  %s1361_s21 = smov 0  }
   0x3 LB: > { %s1376_s22 = sadd.s32 4294967295, %s1311_s21   ;;  %s1145_s23 = sadd.s32 4294967294, %s1311_s21   ;;  %s1311_s21 = sphi %s1361_s21, %s1836_s21   ;;  %s1307_s20 = sphi %s1359_s20, %s1835_s20   ;;  %s1303_s19 = sphi %s1357_s19, %s1834_s19   ;;  %s1299_s18 = sphi %s1355_s18, %s1833_s18  }
   0x4   : > { %s1380_s24 = sadd.s32 1, %s1311_s21   ;;  %s135_s25 = sadd.s32 1, %s1307_s20 }
   0x5   : > { %s132_s26 = ssub.s32 %s1311_s21, %s1380_s24  ;;  %p145_p0 = scmp.ne.s32.totalorder %s1307_s20, %s1303_s19 }
   0x6   : > { %p133_p1 = scmp.eq.s32.totalorder %s132_s26, 0  ;;  %p146_p2 = scmp.eq.s32.totalorder %s1376_s22, 1 }
   0x7   : > { %p151_p3 = scmp.ne.s32.totalorder %s1303_s19, %s1299_s18  ;;  %p152_p4 = scmp.eq.s32.totalorder %s1145_s23, 1 }
   0x8   : > { %s1391_s27 = scalar_select %p133_p1, %s1307_s20, %s135_s25  }
   0x9   : > { %p1393_p5 = por %p146_p2, %p145_p0  ;;  %p1397_p6 = por %p152_p4, %p151_p3 }
   0xa   : > { %p1148_p7 = scmp.ge.s32.totalorder %s1311_s21, 1  ;;  %p190_p8 = scmp.lt.s32.totalorder %s1311_s21, 3 }
   0xc   : > { %p191_p9 = pnand %p1148_p7, %p190_p8 }
   0xd   : > { %p218_p10 = scmp.lt.s32.totalorder (!%p191_p9), %s1376_s22, 1  ;;  %v1313_v0 = vmov (!%p191_p9), 0   ;;  %s1314_s10 = smov (!%p191_p9), 17   ;;  %v226_v4 = vlaneseq (!%p191_p9)  ;;  %vm285_vm11 = vcmask (!%p191_p9), 138240   ;;  %v486_v57 = vld [vmem:[%s1800_s2] sm:$0xff] (!%p191_p9)  ;;  %v487_v58 = vld [vmem:[%s1800_s2 + $0x8] sm:$0xff] (!%p191_p9) }
   0xe   : > { %194 = sbr.rel (%p191_p9) target bundleno = 1129 (0x469), region = 40  ;;  %645 = vmatprep.mubr.bf16.mxu0 (!%p191_p9), %v1313_v0  ;;  %1238 = vset.pattern.permute.xlu1 (!%p191_p9), %v1313_v0  ;;  %s1315_s11 = smov (!%p191_p9), 111   ;;  %v491_v59 = vld [vmem:[%s1800_s2 + $0x28] sm:$0xff] (!%p191_p9)  ;;  %v490_v60 = vld [vmem:[%s1800_s2 + $0x20] sm:$0xff] (!%p191_p9)  ;;  %v489_v61 = vld [vmem:[%s1800_s2 + $0x18] sm:$0xff] (!%p191_p9) }
   0xf   : > { %1237 = vset.pattern.permute.xlu0 (!%p191_p9), %v1313_v0  ;;  %v227_v5 = vand.u32 (!%p191_p9), 127, %v226_v4  ;;  %v1416_v20 = vshrl.u32 (!%p191_p9), %v226_v4, 7  ;;  %s1316_s12 = smov (!%p191_p9), 126   ;;  %s1806_s13 = smov (!%p191_p9), 96   ;;  %v488_v62 = vld [vmem:[%s1800_s2 + $0x10] sm:$0xff] (!%p191_p9)  ;;  %v493_v63 = vld [vmem:[%s1800_s2 + $0x38] sm:$0xff] (!%p191_p9) }
  0x10   : > { %s1318_s14 = smov (!%p191_p9), 127   ;;  %s1804_s15 = smov (!%p191_p9), 95   ;;  %v497_v4 = vld [vmem:[%s1800_s2 + $0x58] sm:$0xff] (!%p191_p9) }
  0x11   : > { %v1152_v6 = vadd.s32 (!%p191_p9), 4294967279, %v227_v5  ;;  %v229_v10 = vadd.s32 (!%p191_p9), 256, %v227_v5  ;;  %v228_v13 = vadd.s32 (!%p191_p9), 128, %v227_v5  ;;  %v308_v22 = vsub.s32 (!%p191_p9), 0, %v1416_v20  ;;  %s1320_s16 = smov (!%p191_p9), 112   ;;  %s1810_s17 = smov (!%p191_p9), 110  }
  0x12   : > { %v312_v25 = vsub.s32 (!%p191_p9), 4, %v1416_v20  ;;  %s1808_s23 = smov (!%p191_p9), 94   ;;  %v496_v5 = vld [vmem:[%s1800_s2 + $0x50] sm:$0xff] (!%p191_p9)  ;;  %s1186_s26 = sshll.u32 (!%p191_p9), %s1376_s22, 7 }
  0x13   : > { %v234_v7 = vsub.s32 (!%p191_p9), 0, %v1152_v6  ;;  %vm233_vm0 = vcmp.lt.s32.totalorder (!%p191_p9), %v1152_v6, 0  ;;  %v1154_v12 = vadd.s32 (!%p191_p9), 4294967279, %v229_v10  ;;  %v1153_v16 = vadd.s32 (!%p191_p9), 4294967279, %v228_v13 }
  0x15   : > { %s219_s30 = scalar_select %p218_p10, %s1376_s22, 1  ;;  %v1155_v8 = vmin.u32 %v1152_v6, %v234_v7  ;;  %v251_v15 = vand.u32 15, %v1154_v12  ;;  %v244_v18 = vand.u32 15, %v1153_v16 }
  0x16   : > { %s1324_s22 = smov [#allocation2]  }
  0x17   : > { %s1185_s6 = sshll.u32 %s219_s30, 3  ;;  %v237_v9 = vand.u32 15, %v1155_v8  ;;  %vm271_vm4 = vcmp.eq.s32.totalorder %v251_v15, 0  ;;  %vm274_vm6 = vcmp.eq.s32.totalorder %v251_v15, 15  ;;  %vm270_vm8 = vcmp.eq.s32.totalorder %v244_v18, 0 }
  0x18   : > { %s1411_s9 = scalar_lea.vmem %s1798_s0, %s1185_s6  ;;  %vm331_vm5 = vmpackc.low %vm271_vm4, %vm271_vm4  ;;  %vm273_vm14 = vcmp.eq.s32.totalorder %v244_v18, 15 }
  0x19   : > { %v275_v1 = vld [vmem:[%s1411_s9] sm:$0xff]  ;;  %v238_v11 = vsub.s32 0, %v237_v9  ;;  %v333_v21 = vsel %vm331_vm5, 65537, %v1313_v0  ;;  %vm303_vm9 = vmpackc.low %vm274_vm6, %vm274_vm6  ;;  %vm363_vm5 = vcmask 1039360   ;;  %vm441_vm6 = vcmask 1043456  }
  0x1a   : > { %v1156_v2 = vcombine.low %v275_v1, %v275_v1  ;;  %v1157_v3 = vcombine.high %v275_v1, %v275_v1  ;;  %v345_v24 = vrot.slane %v333_v21, %v308_v22  ;;  %v305_v26 = vsel %vm303_vm9, 65537, %v1313_v0  ;;  %v492_v1 = vld [vmem:[%s1800_s2 + $0x30] sm:$0xff] }
  0x1b   : > { %v239_v14 = vsel %vm233_vm0, %v238_v11, %v237_v9  ;;  %v317_v32 = vrot.slane %v305_v26, %v308_v22  ;;  %vm399_vm9 = vcmask 908288  }
  0x1c   : > { %281 = vrot.lane.b32.xlu0 %v1156_v2, %s1314_s10  ;;  %vm254_vm1 = vcmp.ne.s32.totalorder %v239_v14, 0  ;;  %vm257_vm2 = vcmp.lt.s32.totalorder %v239_v14, 0  ;;  %v263_v17 = vadd.s32 16, %v239_v14  ;;  %vm1427_vm12 = vcmp.ne.s16.totalorder %v345_v24, 0  ;;  %v495_v2 = vld [vmem:[%s1800_s2 + $0x48] sm:$0xff] }
  0x1d   : > { %vm260_vm3 = vmand %vm257_vm2, %vm254_vm1  ;;  %vm1438_vm0 = vcmp.ne.s16.totalorder %v317_v32, 0 }
  0x1e   : > { %v266_v19 = vsel %vm260_vm3, %v263_v17, %v239_v14 }
  0x1f   : > { %vm269_vm7 = vcmp.eq.s32.totalorder %v266_v19, 0  ;;  %vm272_vm13 = vcmp.eq.s32.totalorder %v266_v19, 15 }
  0x20   : > { %283 = vrot.lane.b32.xlu0 %v1157_v3, %s1314_s10  ;;  %vm330_vm10 = vmpackc.low %vm270_vm8, %vm269_vm7  ;;  %v494_v3 = vld [vmem:[%s1800_s2 + $0x40] sm:$0xff]  ;;  %vm375_vm7 = vcmask 1031168   ;;  %vm390_vm8 = vcmask 916480  }
  0x21   : > { %v332_v30 = vsel %vm330_vm10, 65537, %v1313_v0  ;;  %vm302_vm15 = vmpackc.low %vm273_vm14, %vm272_vm13  ;;  %vm1812_vm10 = vcmask 777216   ;;  %vm411_vm13 = vcmask 900096   ;;  %vm420_vm14 = vcmask 785408  }
  0x22   : > { %v1431_v33 = vrot.slane %v332_v30, %v312_v25  ;;  %v337_v37 = vrot.slane %v332_v30, %v308_v22  ;;  %v304_v38 = vsel %vm302_vm15, 65537, %v1313_v0  ;;  %vm438_vm15 = vcmask 769024  }
  0x23   : > { %v1454_v42 = vrot.slane %v304_v38, %v312_v25  ;;  %v309_v45 = vrot.slane %v304_v38, %v308_v22 }
  0x24   : > { %vm347_vm1 = vcmp.ne.s16.totalorder %v1431_v33, 0  ;;  %vm1450_vm2 = vcmp.ne.s16.totalorder %v337_v37, 0  ;;  %v1323_v33 = vmov 1983009808  }
  0x25   : > { %vm319_vm3 = vcmp.ne.s16.totalorder %v1454_v42, 0  ;;  %vm1465_vm4 = vcmp.ne.s16.totalorder %v309_v45, 0  ;;  %v960_v36 = vunpack.c.l.s4 %v1323_v33 }
  0x27   : > { %v961_v42 = vunpack.c.0.s8 %v960_v36 }
  0x8e   : > { %v282_v23 = vpop.permute.xlu0 %281 }
  0x8f   : > { %v291_v34 = vsel %vm285_vm11, 0, %v282_v23 }
  0x90   : > { %v354_v43 = vrot.slane %v291_v34, 4  ;;  %v349_v44 = vsel %vm1450_vm2, 0, %v291_v34  ;;  %v1474_v51 = vsel %vm1465_vm4, 0, %v291_v34 }
  0x91   : > { %v381_v52 = vrot.slane %v1474_v51, 4  ;;  %v402_v54 = vrot.slane %v349_v44, 4 }
  0x92   : > { %v284_v27 = vpop.permute.xlu0 %283 }
  0x93   : > { %v286_v28 = vsel %vm285_vm11, %v282_v23, %v284_v27  ;;  %v294_v29 = vsel %vm285_vm11, %v284_v27, 0 }
  0x94   : > { %397 = vrot.lane.b32.xlu0 %v294_v29, %s1315_s11  ;;  %395 = vrot.lane.b32.xlu1 %v286_v28, %s1315_s11  ;;  %v351_v35 = vsel %vm1427_vm12, 0, %v294_v29  ;;  %v323_v39 = vsel %vm1438_vm0, 0, %v294_v29  ;;  %v350_v40 = vsel %vm347_vm1, 0, %v286_v28  ;;  %v356_v46 = vrot.slane %v294_v29, 4 }
  0x95   : > { %v1463_v47 = vsel %vm319_vm3, 0, %v286_v28  ;;  %v383_v49 = vrot.slane %v323_v39, 4  ;;  %v355_v50 = vrot.slane %v286_v28, 4  ;;  %v404_v53 = vrot.slane %v351_v35, 4 }
  0x96   : > { %v382_v55 = vrot.slane %v1463_v47, 4  ;;  %v403_v56 = vrot.slane %v350_v40, 4 }
  0x98   : > { %373 = vrot.lane.b32.xlu0 %v351_v35, %s1316_s12  ;;  %393 = vrot.lane.b32.xlu1 %v291_v34, %s1315_s11 }
  0x9c   : > { %418 = vrot.lane.b32.xlu0 %v323_v39, %s1806_s13  ;;  %371 = vrot.lane.b32.xlu1 %v350_v40, %s1316_s12 }
  0xa0   : > { %357 = vrot.lane.b32.xlu0 %v354_v43, %s1318_s14  ;;  %369 = vrot.lane.b32.xlu1 %v349_v44, %s1316_s12 }
  0xa4   : > { %427 = vrot.lane.b32.xlu0 %v356_v46, %s1804_s15  ;;  %416 = vrot.lane.b32.xlu1 %v1463_v47, %s1806_s13 }
  0xa8   : > { %388 = vrot.lane.b32.xlu0 %v383_v49, %s1320_s16  ;;  %359 = vrot.lane.b32.xlu1 %v355_v50, %s1318_s14 }
  0xac   : > { %384 = vrot.lane.b32.xlu0 %v381_v52, %s1320_s16  ;;  %361 = vrot.lane.b32.xlu1 %v356_v46, %s1318_s14 }
  0xb0   : > { %409 = vrot.lane.b32.xlu0 %v404_v53, %s1810_s17  ;;  %425 = vrot.lane.b32.xlu1 %v355_v50, %s1804_s15 }
  0xb4   : > { %405 = vrot.lane.b32.xlu0 %v402_v54, %s1810_s17  ;;  %386 = vrot.lane.b32.xlu1 %v382_v55, %s1320_s16 }
  0xb8   : > { %423 = vrot.lane.b32.xlu0 %v354_v43, %s1804_s15  ;;  %407 = vrot.lane.b32.xlu1 %v403_v56, %s1810_s17 }
  0xbc   : > { %434 = vrot.lane.b32.xlu0 %v350_v40, %s1808_s23  ;;  %414 = vrot.lane.b32.xlu1 %v1474_v51, %s1806_s13  ;;  %s1826_s13 = smov 96  }
  0xc0   : > { %432 = vrot.lane.b32.xlu1 %v349_v44, %s1808_s23  ;;  %500 = vperm.xlu0 %1237, %v486_v57  }
  0xc4   : > { %436 = vrot.lane.b32.xlu1 %v351_v35, %s1808_s23  ;;  %525 = vperm.xlu0 %1237, %v491_v59   ;;  %s215_s23 = sand.u32 1, %s1303_s19  }
  0xc5   : > { %s1149_s25 = sshll.u32 %s215_s23, 3 }
  0xc6   : > { %s217_s30 = scalar_lea.vmem [#allocation2], %s1149_s25 }
  0xc7   : > { %s1086_s6 = sshll.u32 %s217_s30, 4  ;;  %s1758_s6 = int_to_ptr.vmem [resolvable:$true] %s1086_s6 }
  0xc8   : > { %505 = vperm.xlu1 %1238, %v487_v58   ;;  %515 = vperm.xlu0 %1237, %v489_v61  }
  0xcc   : > { %520 = vperm.xlu1 %1238, %v490_v60   ;;  %535 = vperm.xlu0 %1237, %v493_v63   ;;  %v1242_v63 = vld [vmem:[%s1799_s1 + $0x8] sm:$0xff]  }
  0xd0   : > { %510 = vperm.xlu1 %1238, %v488_v62   ;;  %545 = vperm.xlu0 %1237, %v495_v2   ;;  %v1241_v62 = vld [vmem:[%s1799_s1] sm:$0xff]   ;;  %v1244_v2 = vld [vmem:[%s1799_s1 + $0x18] sm:$0xff]  }
  0xd4   : > { %530 = vperm.xlu1 %1238, %v492_v1   ;;  %555 = vperm.xlu0 %1237, %v497_v4   ;;  %v1243_v1 = vld [vmem:[%s1799_s1 + $0x10] sm:$0xff]   ;;  %v1246_v4 = vld [vmem:[%s1799_s1 + $0x28] sm:$0xff]  }
  0xd8   : > { %540 = vperm.xlu1 %1238, %v494_v3   ;;  %v1245_v3 = vld [vmem:[%s1799_s1 + $0x20] sm:$0xff]  }
  0xdc   : > { %550 = vperm.xlu1 %1238, %v496_v5  }
 0x106   : > { %v398_v6 = vpop.permute.xlu0 %397  ;;  %v396_v7 = vpop.permute.xlu1 %395 }
 0x107   : > { %v401_v38 = vsel %vm399_vm9, %v396_v7, %v398_v6 }
 0x10a   : > { %v374_v8 = vpop.permute.xlu0 %373  ;;  %v394_v9 = vpop.permute.xlu1 %393 }
 0x10b   : > { %v400_v40 = vsel %vm399_vm9, %v394_v9, %v396_v7 }
 0x10e   : > { %v419_v10 = vpop.permute.xlu0 %418  ;;  %v372_v11 = vpop.permute.xlu1 %371 }
 0x10f   : > { %v377_v29 = vsel %vm375_vm7, %v372_v11, %v374_v8 }
 0x112   : > { %v358_v12 = vpop.permute.xlu0 %357  ;;  %v370_v13 = vpop.permute.xlu1 %369 }
 0x113   : > { %v376_v30 = vsel %vm375_vm7, %v370_v13, %v372_v11 }
 0x116   : > { %v428_v14 = vpop.permute.xlu0 %427  ;;  %v417_v15 = vpop.permute.xlu1 %416 }
 0x117   : > { %v422_v50 = vsel %vm420_vm14, %v417_v15, %v419_v10 }
 0x11a   : > { %v389_v16 = vpop.permute.xlu0 %388  ;;  %v360_v17 = vpop.permute.xlu1 %359 }
 0x11b   : > { %v364_v18 = vsel %vm363_vm5, %v358_v12, %v360_v17 }
 0x11c   : > { %v444_v24 = vsel %vm441_vm6, %v1474_v51, %v364_v18 }
 0x11e   : > { %v385_v19 = vpop.permute.xlu0 %384  ;;  %v362_v21 = vpop.permute.xlu1 %361 }
 0x11f   : > { %v365_v22 = vsel %vm363_vm5, %v360_v17, %v362_v21 }
 0x120   : > { %v448_v23 = vsel %vm441_vm6, %v1463_v47, %v365_v22 }
 0x121   : > { %613 = vmatprep.subr.bf16.mxu0 %v448_v23 }
 0x122   : > { %v410_v25 = vpop.permute.xlu0 %409  ;;  %614 = vmatpush1.bf16.msra.mxu0 %v444_v24  ;;  %v426_v26 = vpop.permute.xlu1 %425 }
 0x123   : > { %v431_v43 = vsel %vm1812_vm10, %v426_v26, %v428_v14 }
 0x124   : > { %v472_v52 = vsel %vm441_vm6, %v422_v50, %v431_v43 }
 0x126   : > { %v406_v27 = vpop.permute.xlu0 %405  ;;  %v387_v28 = vpop.permute.xlu1 %386 }
 0x127   : > { %v391_v32 = vsel %vm390_vm8, %v385_v19, %v387_v28  ;;  %v392_v34 = vsel %vm390_vm8, %v387_v28, %v389_v16 }
 0x128   : > { %v456_v35 = vsel %vm441_vm6, %v377_v29, %v392_v34  ;;  %v452_v37 = vsel %vm441_vm6, %v376_v30, %v391_v32 }
 0x129   : > { %615 = vmatprep.subr.bf16.mxu0 %v456_v35 }
 0x12a   : > { %616 = vmatpush1.bf16.msra.mxu0 %v452_v37  ;;  %v408_v39 = vpop.permute.xlu1 %407  ;;  %v424_v46 = vpop.permute.xlu0 %423 }
 0x12b   : > { %v412_v44 = vsel %vm411_vm13, %v406_v27, %v408_v39  ;;  %v413_v45 = vsel %vm411_vm13, %v408_v39, %v410_v25  ;;  %v430_v53 = vsel %vm1812_vm10, %v424_v46, %v426_v26  ;;  %vm588_vm10 = vcmask 588800  }
 0x12c   : > { %v464_v47 = vsel %vm441_vm6, %v401_v38, %v413_v45  ;;  %v460_v49 = vsel %vm441_vm6, %v400_v40, %v412_v44 }
 0x12d   : > { %617 = vmatprep.subr.bf16.mxu0 %v464_v47 }
 0x12e   : > { %618 = vmatpush1.bf16.msra.mxu0 %v460_v49  ;;  %v415_v51 = vpop.permute.xlu1 %414  ;;  %v435_v57 = vpop.permute.xlu0 %434 }
 0x12f   : > { %v421_v54 = vsel %vm420_vm14, %v415_v51, %v417_v15  ;;  %619 = vmatprep.subr.bf16.mxu0 %v472_v52 }
 0x130   : > { %v468_v55 = vsel %vm441_vm6, %v421_v54, %v430_v53 }
 0x132   : > { %620 = vmatpush1.bf16.msra.mxu0 %v468_v55  ;;  %v433_v56 = vpop.permute.xlu1 %432 }
 0x133   : > { %v439_v58 = vsel %vm438_vm15, %v433_v56, %v435_v57 }
 0x134   : > { %v608_v61 = vsel %vm441_vm6, %v439_v58, 0 }
 0x136   : > { %v437_v59 = vpop.permute.xlu1 %436 }
 0x137   : > { %v440_v60 = vsel %vm438_vm15, %v435_v57, %v437_v59 }
 0x138   : > { %1164 = vmatprep.subr.msk.bf16.mxu0 %vm441_vm6, %v440_v60  ;;  %vm1593_vm6 = vmneg %vm319_vm3 }
 0x139   : > { %622 = vmatpush1.bf16.msra.mxu0 %v608_v61 }
 0x13c   : > { %1165 = vmatmul.mubr.msk.bf16.vlgmr.msra.gmra.mrb[0].mxu0 %vm588_vm10, %v1241_v62 }
 0x13d   : > { %655 = vmatprep.mubr.bf16.mxu0 %v1313_v0 }
 0x13f   : > { %v501_v10 = vpop.permute.xlu0 %500 }
 0x143   : > { %v526_v16 = vpop.permute.xlu0 %525 }
 0x144   : > { %1166 = vmatmul.mubr.msk.bf16.gmra.mrb[4].mxu0 %vm588_vm10, %v1242_v63 }
 0x145   : > { %665 = vmatprep.mubr.bf16.mxu0 %v1313_v0 }
 0x147   : > { %v506_v9 = vpop.permute.xlu1 %505  ;;  %v516_v30 = vpop.permute.xlu0 %515 }
 0x14b   : > { %v521_v15 = vpop.permute.xlu1 %520  ;;  %v536_v51 = vpop.permute.xlu0 %535 }
 0x14c   : > { %1167 = vmatmul.mubr.msk.bf16.gmra.mrb[8].mxu0 %vm588_vm10, %v1243_v1 }
 0x14d   : > { %675 = vmatprep.mubr.bf16.mxu0 %v1313_v0 }
 0x14f   : > { %v511_v23 = vpop.permute.xlu1 %510 }
 0x153   : > { %v531_v43 = vpop.permute.xlu1 %530 }
 0x154   : > { %1168 = vmatmul.mubr.msk.bf16.gmra.mrb[12].mxu0 %vm588_vm10, %v1244_v2 }
 0x155   : > { %685 = vmatprep.mubr.bf16.mxu0 %v1313_v0 }
 0x15c   : > { %1169 = vmatmul.mubr.msk.bf16.gmra.mrb[16].mxu0 %vm588_vm10, %v1245_v3  ;;  %v541_v3 = vpop.permute.xlu1 %540 }
 0x15d   : > { %695 = vmatprep.mubr.bf16.mxu0 %v1313_v0 }
 0x164   : > { %1170 = vmatmul.mubr.msk.bf16.gmra.mrb[20].mxu0 %vm588_vm10, %v1246_v4  ;;  %vm1173_vm10 = vmneg %vm1465_vm4 }
 0x165   : > { %1053 = vmatprep.mubr.bf16.mxu0 %v1313_v0 }
 0x20f   : > { %v647_v5 = vpop.f32.mrb[0].mxu0 }
 0x210   : > { %v649_v6 = vpop.f32.mrb[1].mxu0  ;;  %v648_v18 = vadd.f32 %v647_v5, %v501_v10 }
 0x211   : > { %v651_v7 = vpop.f32.mrb[2].mxu0  ;;  %v650_v22 = vadd.f32 %v649_v6, %v501_v10 }
 0x212   : > { %v653_v8 = vpop.f32.mrb[3].mxu0  ;;  %v652_v25 = vadd.f32 %v651_v7, %v506_v9 }
 0x213   : > { %v654_v29 = vadd.f32 %v653_v8, %v506_v9  ;;  %v546_v8 = vpop.permute.xlu0 %545 }
 0x217   : > { %v657_v11 = vpop.f32.mrb[4].mxu0 }
 0x218   : > { %v659_v12 = vpop.f32.mrb[5].mxu0  ;;  %v658_v46 = vadd.f32 %v657_v11, %v511_v23 }
 0x219   : > { %v661_v13 = vpop.f32.mrb[6].mxu0  ;;  %v660_v50 = vadd.f32 %v659_v12, %v511_v23 }
 0x21a   : > { %v663_v14 = vpop.f32.mrb[7].mxu0  ;;  %v662_v54 = vadd.f32 %v661_v13, %v516_v30 }
 0x21b   : > { %v664_v58 = vadd.f32 %v663_v14, %v516_v30 }
 0x21f   : > { %v667_v17 = vpop.f32.mrb[8].mxu0 }
 0x220   : > { %v668_v19 = vadd.f32 %v667_v17, %v521_v15  ;;  %v669_v21 = vpop.f32.mrb[9].mxu0 }
 0x221   : > { %v670_v24 = vadd.f32 %v669_v21, %v521_v15  ;;  %v671_v0 = vpop.f32.mrb[10].mxu0 }
 0x222   : > { %v706_v26 = vmul.f32 %v668_v19, %v648_v18  ;;  %v672_v27 = vadd.f32 %v671_v0, %v526_v16  ;;  %v673_v28 = vpop.f32.mrb[11].mxu0  ;;  %v551_v19 = vpop.permute.xlu1 %550 }
 0x223   : > { %v707_v32 = vmul.f32 %v670_v24, %v650_v22  ;;  %v674_v34 = vadd.f32 %v673_v28, %v526_v16  ;;  %v556_v0 = vpop.permute.xlu0 %555 }
 0x224   : > { %v708_v35 = vmul.f32 %v672_v27, %v652_v25  ;;  %v714_v37 = vadd.f32 %v706_v26, %v648_v18 }
 0x225   : > { %v709_v38 = vmul.f32 %v674_v34, %v654_v29  ;;  %v715_v39 = vadd.f32 %v707_v32, %v650_v22 }
 0x226   : > { %v716_v40 = vadd.f32 %v708_v35, %v652_v25 }
 0x227   : > { %v677_v44 = vpop.f32.mrb[12].mxu0  ;;  %v717_v45 = vadd.f32 %v709_v38, %v654_v29 }
 0x228   : > { %v678_v47 = vadd.f32 %v677_v44, %v531_v43  ;;  %v679_v49 = vpop.f32.mrb[13].mxu0 }
 0x229   : > { %v680_v52 = vadd.f32 %v679_v49, %v531_v43  ;;  %v681_v53 = vpop.f32.mrb[14].mxu0 }
 0x22a   : > { %v710_v55 = vmul.f32 %v678_v47, %v658_v46  ;;  %v682_v56 = vadd.f32 %v681_v53, %v536_v51  ;;  %v683_v57 = vpop.f32.mrb[15].mxu0 }
 0x22b   : > { %v711_v59 = vmul.f32 %v680_v52, %v660_v50  ;;  %v684_v60 = vadd.f32 %v683_v57, %v536_v51 }
 0x22c   : > { %v712_v61 = vmul.f32 %v682_v56, %v662_v54  ;;  %v718_v62 = vadd.f32 %v710_v55, %v658_v46 }
 0x22d   : > { %v713_v63 = vmul.f32 %v684_v60, %v664_v58  ;;  %v719_v1 = vadd.f32 %v711_v59, %v660_v50 }
 0x22e   : > { %v720_v2 = vadd.f32 %v712_v61, %v662_v54 }
 0x22f   : > { %v687_v4 = vpop.f32.mrb[16].mxu0  ;;  %v721_v5 = vadd.f32 %v713_v63, %v664_v58  ;;  %v950_v63 = vld [vmem:[%s1801_s3] sm:$0x3f] }
 0x230   : > { %v688_v6 = vadd.f32 %v687_v4, %v541_v3  ;;  %v689_v7 = vpop.f32.mrb[17].mxu0  ;;  %v951_v4 = vld [vmem:[%s1802_s4] sm:$0xf] }
 0x231   : > { %v690_v9 = vadd.f32 %v689_v7, %v541_v3  ;;  %v691_v10 = vpop.f32.mrb[18].mxu0  ;;  %v958_v3 = vcombine.high %v950_v63, %v950_v63 }
 0x232   : > { %v722_v11 = vadd.f32 %v714_v37, %v688_v6  ;;  %v692_v12 = vadd.f32 %v691_v10, %v546_v8  ;;  %v693_v13 = vpop.f32.mrb[19].mxu0 }
 0x233   : > { %v723_v15 = vadd.f32 %v715_v39, %v690_v9  ;;  %v694_v14 = vadd.f32 %v693_v13, %v546_v8 }
 0x234   : > { %v724_v16 = vadd.f32 %v716_v40, %v692_v12 }
 0x235   : > { %v725_v17 = vadd.f32 %v717_v45, %v694_v14 }
 0x236   : > { %v730_v18 = vpack.c.bf16 %v724_v16, %v722_v11 }
 0x237   : > { %v697_v21 = vpop.f32.mrb[20].mxu0  ;;  %v731_v22 = vpack.c.bf16 %v725_v17, %v723_v15 }
 0x238   : > { %v698_v23 = vadd.f32 %v697_v21, %v551_v19  ;;  %v699_v24 = vpop.f32.mrb[21].mxu0  ;;  %738 = vrot.lane.b32.xlu1 %v730_v18, %s1314_s10 }
 0x239   : > { %v700_v25 = vadd.f32 %v699_v24, %v551_v19  ;;  %v701_v26 = vpop.f32.mrb[22].mxu0  ;;  %740 = vrot.lane.b32.xlu0 %v731_v22, %s1314_s10 }
 0x23a   : > { %v726_v27 = vadd.f32 %v718_v62, %v698_v23  ;;  %v702_v28 = vadd.f32 %v701_v26, %v556_v0  ;;  %v703_v29 = vpop.f32.mrb[23].mxu0  ;;  %v964_v62 = vsub.s32 %v961_v42, %v1416_v20 }
 0x23b   : > { %v727_v30 = vadd.f32 %v719_v1, %v700_v25  ;;  %v704_v32 = vadd.f32 %v703_v29, %v556_v0 }
 0x23c   : > { %v728_v34 = vadd.f32 %v720_v2, %v702_v28  ;;  %v1697_v1 = vrot.slane %v950_v63, %v964_v62  ;;  %v1703_v20 = vrot.slane %v958_v3, %v964_v62 }
 0x23d   : > { %v729_v35 = vadd.f32 %v721_v5, %v704_v32 }
 0x23e   : > { %v732_v37 = vpack.c.bf16 %v728_v34, %v726_v27  ;;  %v973_v2 = vcombine.high %v1697_v1, %v1697_v1 }
 0x23f   : > { %v733_v38 = vpack.c.bf16 %v729_v35, %v727_v30 }
 0x240   : > { %742 = vrot.lane.b32.xlu1 %v732_v37, %s1314_s10  ;;  %1012 = vmatprep.mubr.bf16.mxu1 %v973_v2 }
 0x241   : > { %744 = vrot.lane.b32.xlu0 %v733_v38, %s1314_s10  ;;  %s1825_s10 = smov 110  }
 0x2aa   : > { %v739_v39 = vpop.permute.xlu1 %738 }
 0x2ab   : > { %v751_v43 = vsel %vm285_vm11, 0, %v739_v39  ;;  %v741_v44 = vpop.permute.xlu0 %740 }
 0x2ac   : > { %v746_v45 = vsel %vm285_vm11, %v739_v39, %v741_v44  ;;  %v757_v46 = vsel %vm285_vm11, %v741_v44, 0  ;;  %778 = vrot.lane.b32.xlu1 %v751_v43, %s1318_s14  ;;  %v768_v53 = vsel %vm1450_vm2, 0, %v751_v43  ;;  %v762_v55 = vsel %vm1465_vm4, 0, %v751_v43 }
 0x2ad   : > { %782 = vrot.lane.b32.xlu0 %v757_v46, %s1318_s14  ;;  %1172 = vmatprep.subr.msk.bf16.mxu1 %vm1593_vm6, %v746_v45  ;;  %v770_v51 = vsel %vm1427_vm12, 0, %v757_v46  ;;  %v764_v54 = vsel %vm1438_vm0, 0, %v757_v46  ;;  %v769_v56 = vsel %vm347_vm1, 0, %v746_v45  ;;  %v763_v57 = vsel %vm319_vm3, 0, %v746_v45 }
 0x2ae   : > { %1174 = vmatpush1.bf16.msk.msra.mxu1 %vm1173_vm10, %v751_v43 }
 0x2b0   : > { %850 = vrot.lane.b32.xlu1 %v751_v43, %s1315_s11 }
 0x2b1   : > { %854 = vrot.lane.b32.xlu0 %v757_v46, %s1315_s11 }
 0x2b2   : > { %v743_v47 = vpop.permute.xlu1 %742 }
 0x2b3   : > { %v745_v49 = vpop.permute.xlu0 %744  ;;  %v1618_v52 = vsel %vm285_vm11, 0, %v743_v47 }
 0x2b4   : > { %v1612_v50 = vsel %vm285_vm11, %v743_v47, %v745_v49  ;;  %780 = vrot.lane.b32.xlu1 %v746_v45, %s1318_s14  ;;  %v771_v58 = vsel %vm1450_vm2, 0, %v1618_v52  ;;  %v765_v59 = vsel %vm1465_vm4, 0, %v1618_v52  ;;  %v760_v60 = vsel %vm285_vm11, %v745_v49, 0 }
 0x2b5   : > { %808 = vrot.lane.b32.xlu0 %v770_v51, %s1316_s12  ;;  %1176 = vmatprep.subr.msk.bf16.mxu1 %vm1593_vm6, %v1612_v50  ;;  %v773_v41 = vsel %vm1427_vm12, 0, %v760_v60  ;;  %v772_v48 = vsel %vm347_vm1, 0, %v1612_v50  ;;  %v767_v61 = vsel %vm1438_vm0, 0, %v760_v60  ;;  %v766_v31 = vsel %vm319_vm3, 0, %v1612_v50 }
 0x2b6   : > { %1178 = vmatpush1.bf16.msk.msra.mxu1 %vm1173_vm10, %v1618_v52  ;;  %vm1829_vm11 = vcmask 777216   ;;  %vm976_vm2 = vcmask 261120  }
 0x2b7   : > { %vm1830_vm12 = vmmov %vm1829_vm11 }
 0x2b8   : > { %804 = vrot.lane.b32.xlu1 %v768_v53, %s1316_s12  ;;  %vm1831_vm0 = vmmov %vm1829_vm11 }
 0x2b9   : > { %834 = vrot.lane.b32.xlu0 %v764_v54, %s1320_s16  ;;  %vm1832_vm1 = vmmov %vm1831_vm0 }
 0x2bc   : > { %830 = vrot.lane.b32.xlu1 %v762_v55, %s1320_s16 }
 0x2bd   : > { %874 = vrot.lane.b32.xlu0 %v770_v51, %s1825_s10 }
 0x2c0   : > { %852 = vrot.lane.b32.xlu1 %v746_v45, %s1315_s11 }
 0x2c1   : > { %784 = vrot.lane.b32.xlu0 %v1618_v52, %s1318_s14 }
 0x2c4   : > { %870 = vrot.lane.b32.xlu1 %v768_v53, %s1825_s10 }
 0x2c5   : > { %856 = vrot.lane.b32.xlu0 %v1618_v52, %s1315_s11 }
 0x2c8   : > { %806 = vrot.lane.b32.xlu1 %v769_v56, %s1316_s12 }
 0x2c9   : > { %786 = vrot.lane.b32.xlu0 %v1612_v50, %s1318_s14 }
 0x2cc   : > { %832 = vrot.lane.b32.xlu1 %v763_v57, %s1320_s16 }
 0x2cd   : > { %810 = vrot.lane.b32.xlu0 %v771_v58, %s1316_s12 }
 0x2d0   : > { %872 = vrot.lane.b32.xlu1 %v769_v56, %s1825_s10 }
 0x2d1   : > { %836 = vrot.lane.b32.xlu0 %v765_v59, %s1320_s16 }
 0x2d4   : > { %788 = vrot.lane.b32.xlu1 %v760_v60, %s1318_s14 }
 0x2d5   : > { %858 = vrot.lane.b32.xlu0 %v1612_v50, %s1315_s11 }
 0x2d8   : > { %860 = vrot.lane.b32.xlu1 %v760_v60, %s1315_s11  ;;  %s1827_s11 = smov 95  }
 0x2d9   : > { %876 = vrot.lane.b32.xlu0 %v771_v58, %s1825_s10 }
 0x2dc   : > { %814 = vrot.lane.b32.xlu1 %v773_v41, %s1316_s12 }
 0x2dd   : > { %812 = vrot.lane.b32.xlu0 %v772_v48, %s1316_s12  ;;  %s1828_s12 = smov 94  }
 0x2e0   : > { %892 = vrot.lane.b32.xlu1 %v763_v57, %s1826_s13 }
 0x2e1   : > { %894 = vrot.lane.b32.xlu0 %v764_v54, %s1826_s13 }
 0x2e4   : > { %840 = vrot.lane.b32.xlu1 %v767_v61, %s1320_s16 }
 0x2e5   : > { %838 = vrot.lane.b32.xlu0 %v766_v31, %s1320_s16 }
 0x2e8   : > { %890 = vrot.lane.b32.xlu1 %v762_v55, %s1826_s13 }
 0x2e9   : > { %896 = vrot.lane.b32.xlu0 %v765_v59, %s1826_s13 }
 0x2ec   : > { %912 = vrot.lane.b32.xlu1 %v746_v45, %s1827_s11 }
 0x2ed   : > { %914 = vrot.lane.b32.xlu0 %v757_v46, %s1827_s11 }
 0x2f0   : > { %910 = vrot.lane.b32.xlu1 %v751_v43, %s1827_s11 }
 0x2f1   : > { %932 = vrot.lane.b32.xlu0 %v769_v56, %s1828_s12 }
 0x2f4   : > { %880 = vrot.lane.b32.xlu1 %v773_v41, %s1825_s10 }
 0x2f5   : > { %878 = vrot.lane.b32.xlu0 %v772_v48, %s1825_s10  ;;  %s1072_s10 = scalar_lea.sflag [#allocation3], %s215_s23 }
 0x2f8   : > { %934 = vrot.lane.b32.xlu1 %v770_v51, %s1828_s12 }
 0x2f9   : > { %930 = vrot.lane.b32.xlu0 %v768_v53, %s1828_s12 }
 0x2fc   : > { %900 = vrot.lane.b32.xlu1 %v767_v61, %s1826_s13 }
 0x2fd   : > { %898 = vrot.lane.b32.xlu0 %v766_v31, %s1826_s13  ;;  %s1249_s13 = scalar_lea.vmem %s1758_s6, 128 }
 0x2fe   : > { %p1250_p11 = scmp.ne.s32.totalorder %s1758_s6, %s1249_s13 }
 0x300   : > { %918 = vrot.lane.b32.xlu1 %v1612_v50, %s1827_s11  ;;  %p1251_p12 = pnand %p1250_p11, %p1393_p5 }
 0x301   : > { %920 = vrot.lane.b32.xlu0 %v760_v60, %s1827_s11 }
 0x302   : > { %p1252_p13 = pneg %p1251_p12 }
 0x304   : > { %916 = vrot.lane.b32.xlu1 %v1618_v52, %s1827_s11  ;;  %s1253_s11 = sshll.u32 %s1324_s22, 4  ;;  %s1254_s11 = int_to_ptr.vmem [resolvable:$false] %s1253_s11 }
 0x305   : > { %938 = vrot.lane.b32.xlu0 %v772_v48, %s1828_s12  ;;  %p1256_p0 = scmp.lt.s32.totalorder %s1758_s6, %s1254_s11 }
 0x308   : > { %940 = vrot.lane.b32.xlu1 %v773_v41, %s1828_s12 }
 0x309   : > { %936 = vrot.lane.b32.xlu0 %v771_v58, %s1828_s12  ;;  %s1255_s12 = scalar_lea.vmem %s1254_s11, 256 }
 0x30a   : > { %p1257_p1 = scmp.lt.s32.totalorder %s1255_s12, %s1249_s13 }
 0x30c   : > { %954 = vperm.xlu1 %1238, %v951_v4   ;;  %p1258_p2 = por %p1257_p1, %p1256_p0 }
 0x30e   : > { %p1259_p3 = pnand %p1258_p2, %p1252_p13 }
 0x31e   : > { %v779_v5 = vpop.permute.xlu1 %778 }
 0x31f   : > { %v783_v6 = vpop.permute.xlu0 %782 }
 0x322   : > { %v851_v7 = vpop.permute.xlu1 %850 }
 0x323   : > { %v855_v8 = vpop.permute.xlu0 %854 }
 0x326   : > { %v781_v9 = vpop.permute.xlu1 %780 }
 0x327   : > { %v809_v10 = vpop.permute.xlu0 %808  ;;  %v791_v11 = vsel %vm363_vm5, %v781_v9, %v783_v6  ;;  %v790_v12 = vsel %vm363_vm5, %v779_v5, %v781_v9 }
 0x328   : > { %984 = vmatprep.subr.bf16.mxu1 %v791_v11 }
 0x329   : > { %985 = vmatpush1.bf16.msra.mxu1 %v790_v12 }
 0x32a   : > { %v805_v13 = vpop.permute.xlu1 %804 }
 0x32b   : > { %v835_v15 = vpop.permute.xlu0 %834 }
 0x32e   : > { %v831_v14 = vpop.permute.xlu1 %830 }
 0x32f   : > { %v875_v16 = vpop.permute.xlu0 %874 }
 0x332   : > { %v853_v17 = vpop.permute.xlu1 %852 }
 0x333   : > { %v785_v18 = vpop.permute.xlu0 %784  ;;  %v863_v54 = vsel %vm399_vm9, %v853_v17, %v855_v8  ;;  %v862_v56 = vsel %vm399_vm9, %v851_v7, %v853_v17 }
 0x336   : > { %v871_v19 = vpop.permute.xlu1 %870 }
 0x337   : > { %v857_v21 = vpop.permute.xlu0 %856 }
 0x33a   : > { %v807_v22 = vpop.permute.xlu1 %806 }
 0x33b   : > { %v787_v23 = vpop.permute.xlu0 %786  ;;  %v817_v32 = vsel %vm375_vm7, %v807_v22, %v809_v10  ;;  %v816_v37 = vsel %vm375_vm7, %v805_v13, %v807_v22 }
 0x33c   : > { %v792_v30 = vsel %vm363_vm5, %v785_v18, %v787_v23 }
 0x33e   : > { %v833_v24 = vpop.permute.xlu1 %832 }
 0x33f   : > { %v811_v0 = vpop.permute.xlu0 %810  ;;  %v843_v45 = vsel %vm390_vm8, %v833_v24, %v835_v15  ;;  %v842_v47 = vsel %vm390_vm8, %v831_v14, %v833_v24 }
 0x342   : > { %v873_v25 = vpop.permute.xlu1 %872 }
 0x343   : > { %v837_v26 = vpop.permute.xlu0 %836  ;;  %v883_v48 = vsel %vm411_vm13, %v873_v25, %v875_v16  ;;  %v882_v31 = vsel %vm411_vm13, %v871_v19, %v873_v25 }
 0x346   : > { %v789_v27 = vpop.permute.xlu1 %788 }
 0x347   : > { %v859_v28 = vpop.permute.xlu0 %858  ;;  %v793_v29 = vsel %vm363_vm5, %v787_v23, %v789_v27 }
 0x348   : > { %986 = vmatprep.subr.bf16.mxu1 %v793_v29  ;;  %v864_v60 = vsel %vm399_vm9, %v857_v21, %v859_v28 }
 0x349   : > { %987 = vmatpush1.bf16.msra.mxu1 %v792_v30 }
 0x34a   : > { %988 = vmatprep.subr.bf16.mxu1 %v817_v32  ;;  %v861_v34 = vpop.permute.xlu1 %860 }
 0x34b   : > { %v877_v35 = vpop.permute.xlu0 %876  ;;  %v865_v58 = vsel %vm399_vm9, %v859_v28, %v861_v34  ;;  %v1248_v28 = vld [vmem:[%s1411_s9] sm:$0xff]  ;;  %s1756_s9 = scalar_lea.hbm %s1803_s5, %s1186_s26 }
 0x34c   : > { %v1062_v29 = vunpack.c.l.bf16 %v1248_v28  ;;  %v1063_v34 = vunpack.c.h.bf16 %v1248_v28 }
 0x34d   : > { %989 = vmatpush1.bf16.msra.mxu1 %v816_v37 }
 0x34e   : > { %v815_v38 = vpop.permute.xlu1 %814 }
 0x34f   : > { %v813_v39 = vpop.permute.xlu0 %812 }
 0x350   : > { %v819_v40 = vsel %vm375_vm7, %v813_v39, %v815_v38  ;;  %v818_v43 = vsel %vm375_vm7, %v811_v0, %v813_v39 }
 0x351   : > { %990 = vmatprep.subr.bf16.mxu1 %v819_v40 }
 0x352   : > { %991 = vmatpush1.bf16.msra.mxu1 %v818_v43  ;;  %v893_v44 = vpop.permute.xlu1 %892 }
 0x353   : > { %v895_v46 = vpop.permute.xlu0 %894  ;;  %992 = vmatprep.subr.bf16.mxu1 %v843_v45 }
 0x354   : > { %v903_v2 = vsel %vm420_vm14, %v893_v44, %v895_v46 }
 0x356   : > { %993 = vmatpush1.bf16.msra.mxu1 %v842_v47  ;;  %v841_v49 = vpop.permute.xlu1 %840 }
 0x357   : > { %v839_v50 = vpop.permute.xlu0 %838 }
 0x358   : > { %v845_v51 = vsel %vm390_vm8, %v839_v50, %v841_v49  ;;  %v844_v52 = vsel %vm390_vm8, %v837_v26, %v839_v50 }
 0x359   : > { %994 = vmatprep.subr.bf16.mxu1 %v845_v51 }
 0x35a   : > { %995 = vmatpush1.bf16.msra.mxu1 %v844_v52  ;;  %v891_v53 = vpop.permute.xlu1 %890 }
 0x35b   : > { %v897_v55 = vpop.permute.xlu0 %896  ;;  %996 = vmatprep.subr.bf16.mxu1 %v863_v54  ;;  %v902_v6 = vsel %vm420_vm14, %v891_v53, %v893_v44 }
 0x35e   : > { %997 = vmatpush1.bf16.msra.mxu1 %v862_v56  ;;  %v913_v57 = vpop.permute.xlu1 %912 }
 0x35f   : > { %v915_v59 = vpop.permute.xlu0 %914  ;;  %998 = vmatprep.subr.bf16.mxu1 %v865_v58 }
 0x360   : > { %v923_v12 = vsel %vm1829_vm11, %v913_v57, %v915_v59 }
 0x362   : > { %999 = vmatpush1.bf16.msra.mxu1 %v864_v60  ;;  %v911_v41 = vpop.permute.xlu1 %910 }
 0x363   : > { %v933_v61 = vpop.permute.xlu0 %932  ;;  %1000 = vmatprep.subr.bf16.mxu1 %v883_v48  ;;  %v922_v15 = vsel %vm1830_vm12, %v911_v41, %v913_v57 }
 0x366   : > { %1001 = vmatpush1.bf16.msra.mxu1 %v882_v31  ;;  %v881_v33 = vpop.permute.xlu1 %880 }
 0x367   : > { %v879_v36 = vpop.permute.xlu0 %878 }
 0x368   : > { %v885_v42 = vsel %vm411_vm13, %v879_v36, %v881_v33  ;;  %v884_v62 = vsel %vm411_vm13, %v877_v35, %v879_v36 }
 0x369   : > { %1002 = vmatprep.subr.bf16.mxu1 %v885_v42 }
 0x36a   : > { %1003 = vmatpush1.bf16.msra.mxu1 %v884_v62  ;;  %v935_v63 = vpop.permute.xlu1 %934 }
 0x36b   : > { %v931_v3 = vpop.permute.xlu0 %930  ;;  %1004 = vmatprep.subr.bf16.mxu1 %v903_v2  ;;  %v943_v4 = vsel %vm438_vm15, %v933_v61, %v935_v63 }
 0x36c   : > { %v942_v5 = vsel %vm438_vm15, %v931_v3, %v933_v61  ;;  %1021 = vmatprep.subr.bf16.mxu0 %v943_v4 }
 0x36d   : > { %1022 = vmatpush1.bf16.msra.mxu0 %v942_v5 }
 0x36e   : > { %1005 = vmatpush1.bf16.msra.mxu1 %v902_v6  ;;  %v901_v7 = vpop.permute.xlu1 %900 }
 0x36f   : > { %v899_v8 = vpop.permute.xlu0 %898 }
 0x370   : > { %v905_v9 = vsel %vm420_vm14, %v899_v8, %v901_v7  ;;  %v904_v10 = vsel %vm420_vm14, %v897_v55, %v899_v8 }
 0x371   : > { %1006 = vmatprep.subr.bf16.mxu1 %v905_v9 }
 0x372   : > { %1007 = vmatpush1.bf16.msra.mxu1 %v904_v10  ;;  %v919_v11 = vpop.permute.xlu1 %918 }
 0x373   : > { %v921_v13 = vpop.permute.xlu0 %920  ;;  %1008 = vmatprep.subr.bf16.mxu1 %v923_v12 }
 0x374   : > { %v925_v16 = vsel %vm1831_vm0, %v919_v11, %v921_v13 }
 0x376   : > { %1009 = vmatpush1.bf16.msra.mxu1 %v922_v15  ;;  %v917_v14 = vpop.permute.xlu1 %916 }
 0x377   : > { %v939_v17 = vpop.permute.xlu0 %938  ;;  %1010 = vmatprep.subr.bf16.mxu1 %v925_v16  ;;  %v924_v18 = vsel %vm1832_vm1, %v917_v14, %v919_v11 }
 0x37a   : > { %1011 = vmatpush1.bf16.msra.mxu1 %v924_v18  ;;  %v941_v19 = vpop.permute.xlu1 %940 }
 0x37b   : > { %v937_v21 = vpop.permute.xlu0 %936  ;;  %v945_v22 = vsel %vm438_vm15, %v939_v17, %v941_v19 }
 0x37c   : > { %v944_v23 = vsel %vm438_vm15, %v937_v21, %v939_v17  ;;  %1023 = vmatprep.subr.bf16.mxu0 %v945_v22 }
 0x37d   : > { %1013 = vmatmul.mubr.bf16.vlgmr.msra.gmra.mrb[0].mxu1 %v1697_v1  ;;  %1024 = vmatpush1.bf16.msra.mxu0 %v944_v23 }
 0x380   : > { %1179 = vmatmul.mubr.msk.bf16.vlgmr.msra.gmra.mrb[24].mxu0 %vm976_vm2, %v1703_v20 }
 0x38b   : > { %v955_v24 = vpop.permute.xlu1 %954 }
 0x450   : > { %v1014_v0 = vpop.f32.mrb[0].mxu1 }
 0x451   : > { %v1015_v25 = vadd.f32 %v1014_v0, %v955_v24  ;;  %v1016_v26 = vpop.f32.mrb[1].mxu1 }
 0x452   : > { %v1017_v27 = vadd.f32 %v1016_v26, %v955_v24  ;;  %v1018_v30 = vpop.f32.mrb[2].mxu1 }
 0x453   : > { %v1055_v32 = vpop.f32.mrb[24].mxu0  ;;  %v1019_v35 = vpop.f32.mrb[3].mxu1 }
 0x454   : > { %v1056_v37 = vadd.f32 %v1055_v32, %v1015_v25  ;;  %v1057_v1 = vpop.f32.mrb[25].mxu0 }
 0x455   : > { %v1058_v38 = vadd.f32 %v1057_v1, %v1017_v27  ;;  %v1059_v39 = vpop.f32.mrb[26].mxu0 }
 0x456   : > { %v1064_v20 = vadd.f32 %v1062_v29, %v1056_v37  ;;  %v1060_v40 = vpop.f32.mrb[27].mxu0 }
 0x457   : > { %v1065_v43 = vadd.f32 %v1063_v34, %v1058_v38 }
 0x459   : > { %v1068_v44 = vcombine.low %v1064_v20, %v1065_v43 }
 0x45b   : > { %1070 = vst [vmem:[%s217_s30] sm:$0xff] %v1068_v44 }
 0x45c   : > { %1262 = shalt.err (!%p1259_p3)
}
 0x45d   : > { %s1263_s14 = scalar_lea.hbm %s1756_s9, 128  ;;  %s1267_s17 = scalar_lea.hbm %s1803_s5, 256 }
 0x45e   : > { %p1264_p4 = scmp.ne.s32.totalorder %s1756_s9, %s1263_s14  ;;  %p1268_p9 = scmp.lt.u32.totalorder %s1756_s9, %s1803_s5 }
 0x45f   : > { %p1269_p10 = scmp.lt.u32.totalorder %s1267_s17, %s1263_s14  ;;  %p1271_p12 = scmp.lt.u32.totalorder %s1263_s14, %s1756_s9 }
 0x460   : > { %p1265_p7 = pnand %p1264_p4, %p1393_p5 }
 0x461   : > { %p1270_p11 = por %p1269_p10, %p1268_p9 }
 0x462   : > { %p1266_p8 = pneg %p1265_p7 }
 0x463   : > { %p1272_p13 = por %p1271_p12, %p1270_p11 }
 0x465   : > { %p1273_p0 = pnand %p1272_p13, %p1266_p8 }
 0x467   : > { %1276 = shalt.err (!%p1273_p0)
}
 0x468   : > { %1187 = dma.vmem_to_hbm [thread:$0]  (%p1393_p5), %s1758_s6, 128, %s1756_s9, %s1072_s10  }
 0x469 PF: > { %p1193_p1 = scmp.ge.s32.totalorder %s1311_s21, 2  ;;  %s1098_s26 = sand.u32 1, %s1299_s18  }
 0x46a   : > { %s1099_s30 = scalar_lea.sflag [#allocation3], %s1098_s26 }
 0x46b   : > { %p1190_p2 = pnand %p1193_p1, %p1397_p6 }
 0x46d   : > { %1294 = dma.done.wait (!%p1190_p2), %s1099_s30, 128  }
 0x46e   : > { %1296 = vsyncadd (!%p1190_p2), %s1099_s30, 4294967168  ;;  %p15_p3 = scmp.ge.s32.totalorder %s1380_s24, 4   ;;  %s1833_s18 = smov %s1303_s19 }
 0x46f   : > { %s1834_s19 = smov %s1307_s20  ;;  %s1835_s20 = smov %s1391_s27 }
 0x470   : > { %s1836_s21 = smov %s1380_s24  ;;  %17 = sbr.rel (!%p15_p3) target bundleno = 3 (0x3), region = 75 }
 0x477   :  { %1104 = vsyncpa [#allocation3], 1 }
 0x478   :  { %1106 = vsyncpa [#allocation3 + $0x1], 1 }

</bundles_post_ra>
